<compile_context>
chip_gen: v5e
topology: v5e:2x2
jax: 0.10.0
libtpu: 0.0.40
codegen_flags: <defaults>
</compile_context>

<pallas_src>
import math

import jax
import jax.numpy as jnp
from jax.experimental import pallas as pl
from jax.experimental.pallas import tpu as pltpu

_LANES = 128
# Safe on every generation: v5e/v6e physical VMEM is 128 MiB, v7x is 64 MiB.
_VMEM_LIMIT_BYTES = 32 * 1024 * 1024


def _round_up(x, m):
    return (x + m - 1) // m * m


def _device_kind():
    try:
        return jax.devices()[0].device_kind.lower()
    except Exception:
        return ""


def _is_v7x():
    return "v7" in _device_kind()


def _num_splits():
    # Leading "parallel" grid axis: 2 on v7x (two TensorCores / two EUPs per
    # chip), 1 on single-TC chips (v5e/v6e) where the split only adds overhead.
    return 2 if _is_v7x() else 1


def _to_slab(x, pad_value):
    """Flatten row-major into a lane-dense (rows, 128) slab.

    Pads only up to a multiple of 8*128 elements, so the common case
    (size % 1024 == 0) is a zero-copy reshape; otherwise a single small-pad
    copy.  The ragged tail is additionally masked inside the kernels, so the
    pad value is belt-and-suspenders only.
    """
    flat = x.reshape(-1)
    n = flat.shape[0]
    rows = _round_up(max(pl.cdiv(n, _LANES), 1), 8)
    pad = rows * _LANES - n
    if pad:
        flat = jnp.concatenate(
            [flat, jnp.full((pad,), pad_value, dtype=flat.dtype)])
    return flat.reshape(rows, _LANES)


def _plan(rows_list, nsplit, cap):
    """Choose a common grid length and per-input block rows.

    The largest input determines the number of grid steps; every other input
    gets block rows scaled so all streams finish in (about) the same number of
    steps.  Returns (inner, [(block_rows, blocks), ...]).
    """
    rows_max = max(rows_list)
    blocks0 = pl.cdiv(rows_max, min(cap, rows_max))
    inner = pl.cdiv(blocks0, nsplit)
    steps = nsplit * inner
    plans = []
    for rows in rows_list:
        br = min(rows, _round_up(pl.cdiv(rows, steps), 8))   # multiple of 8, <= cap
        plans.append((br, pl.cdiv(rows, br)))
    return inner, plans


def _clamped_index_map(inner, blocks, steps):
    """Block index map for grid (p, i): logical block = p*inner + i.

    When the grid has more steps than real blocks (duplicate tail steps), the
    index is clamped in-bounds; the in-kernel mask zeroes their contribution.
    """
    if blocks == steps:
        return lambda p, i: (p * inner + i, 0)
    last = blocks - 1
    return lambda p, i: (jnp.minimum(p * inner + i, last), 0)


def _block_mask(n_elems, block_rows, inner):
    """(block_rows, 128) bool mask of valid elements for the current step."""
    # NOTE: int32 global indices -> valid for tensors up to 2**31 elements.
    blk = pl.program_id(0) * inner + pl.program_id(1)      # logical block index
    base = blk * (block_rows * _LANES)
    ridx = jax.lax.broadcasted_iota(jnp.int32, (block_rows, _LANES), 0)
    lidx = jax.lax.broadcasted_iota(jnp.int32, (block_rows, _LANES), 1)
    return (base + ridx * _LANES + lidx) < n_elems


def _sublane_partial(x):
    """(block_rows, 128) -> (8, 128): sum groups of 8 sublanes (pure VPU adds,
    hidden under the HBM DMA; keeps the VMEM scratch accumulators tiny)."""
    return jnp.sum(x.reshape(-1, 8, _LANES), axis=0)


# ----------------------------------------------------------------------------
# Kernels
# ----------------------------------------------------------------------------
def _make_sse_kernel(n_elems, block_rows, inner, needs_mask):
    def kernel(t_ref, a_ref, b_ref, out_ref, acc_ntc_ref, acc_ref):
        i = pl.program_id(1)

        @pl.when(i == 0)
        def _():
            acc_ntc_ref[...] = jnp.zeros_like(acc_ntc_ref)
            acc_ref[...] = jnp.zeros_like(acc_ref)

        t = t_ref[...].astype(jnp.float32)
        da = a_ref[...].astype(jnp.float32) - t
        db = b_ref[...].astype(jnp.float32) - t
        if needs_mask:
            valid = _block_mask(n_elems, block_rows, inner)
            da = jnp.where(valid, da, 0.0)
            db = jnp.where(valid, db, 0.0)
        acc_ntc_ref[...] += _sublane_partial(da * da)
        acc_ref[...] += _sublane_partial(db * db)

        @pl.when(i == pl.num_programs(1) - 1)
        def _():
            s_ntc = jnp.sum(acc_ntc_ref[...])
            s_dir = jnp.sum(acc_ref[...])
            row = jax.lax.broadcasted_iota(jnp.int32, out_ref.shape, 1)
            out_ref[...] = jnp.where(row == 0, s_ntc,
                                     jnp.where(row == 1, s_dir, 0.0))

    return kernel


def _make_log_pair_kernel(ny, br_y, mask_y, nz, br_z, mask_z, inner):
    def kernel(y_ref, z_ref, out_ref, acc_y_ref, acc_z_ref):
        i = pl.program_id(1)

        @pl.when(i == 0)
        def _():
            acc_y_ref[...] = jnp.zeros_like(acc_y_ref)
            acc_z_ref[...] = jnp.zeros_like(acc_z_ref)

        yv = y_ref[...].astype(jnp.float32)
        zv = z_ref[...].astype(jnp.float32)
        if mask_y:
            yv = jnp.where(_block_mask(ny, br_y, inner), yv, 1.0)
        if mask_z:
            zv = jnp.where(_block_mask(nz, br_z, inner), zv, 1.0)
        acc_y_ref[...] += _sublane_partial(jnp.log(yv))
        acc_z_ref[...] += _sublane_partial(jnp.log(zv))

        @pl.when(i == pl.num_programs(1) - 1)
        def _():
            sy = jnp.sum(acc_y_ref[...])
            sz = jnp.sum(acc_z_ref[...])
            row = jax.lax.broadcasted_iota(jnp.int32, out_ref.shape, 1)
            out_ref[...] = jnp.where(row == 0, sy,
                                     jnp.where(row == 1, sz, 0.0))

    return kernel


# ----------------------------------------------------------------------------
# pallas_call wrappers
# ----------------------------------------------------------------------------
def _sse_pair_reduce(target, x_hat_ntc, x_hat):
    """Returns (sum((x_hat_ntc - target)^2), sum((x_hat - target)^2))."""
    n = int(target.size)
    nsplit = _num_splits()
    cap = 4096 if _is_v7x() else 2048     # 2 MiB / 1 MiB f32 per pipeline buffer

    t2 = _to_slab(target, 0)
    a2 = _to_slab(x_hat_ntc, 0)
    b2 = _to_slab(x_hat, 0)
    rows = t2.shape[0]

    inner, ((br, blocks),) = _plan([rows], nsplit, cap)
    steps = nsplit * inner
    needs_mask = (n != steps * br * _LANES)

    idx_map = _clamped_index_map(inner, blocks, steps)
    in_spec = pl.BlockSpec((br, _LANES), idx_map)
    out_spec = pl.BlockSpec((1, 8, _LANES), lambda p, i: (p, 0, 0))

    nbytes = sum(int(s.size) * s.dtype.itemsize for s in (t2, a2, b2))
    cost = pl.CostEstimate(flops=6 * n, transcendentals=0,
                           bytes_accessed=int(nbytes))

    out = pl.pallas_call(
        _make_sse_kernel(n, br, inner, needs_mask),
        out_shape=jax.ShapeDtypeStruct((nsplit, 8, _LANES), jnp.float32),
        grid_spec=pltpu.PrefetchScalarGridSpec(
            num_scalar_prefetch=0,
            grid=(nsplit, inner),
            in_specs=[in_spec, in_spec, in_spec],
            out_specs=out_spec,
            scratch_shapes=[pltpu.VMEM((8, _LANES), jnp.float32),
                            pltpu.VMEM((8, _LANES), jnp.float32)]),
        compiler_params=pltpu.CompilerParams(
            dimension_semantics=("parallel", "arbitrary"),
            vmem_limit_bytes=_VMEM_LIMIT_BYTES),
        cost_estimate=cost,
    )(t2, a2, b2)

    return jnp.sum(out[:, 0, 0]), jnp.sum(out[:, 1, 0])


def _log_pair_sum(y, z):
    """Returns (sum(log(y)), sum(log(z))) from a single fused pallas_call."""
    ny, nz = int(y.size), int(z.size)
    nsplit = _num_splits()
    cap = 8192 if _is_v7x() else 4096

    y2 = _to_slab(y, 1)                   # pad 1.0 -> log(1) = 0 (also masked)
    z2 = _to_slab(z, 1)
    rows_y, rows_z = y2.shape[0], z2.shape[0]

    inner, ((br_y, blocks_y), (br_z, blocks_z)) = _plan(
        [rows_y, rows_z], nsplit, cap)
    steps = nsplit * inner
    mask_y = (ny != steps * br_y * _LANES)
    mask_z = (nz != steps * br_z * _LANES)

    in_specs = [
        pl.BlockSpec((br_y, _LANES), _clamped_index_map(inner, blocks_y, steps)),
        pl.BlockSpec((br_z, _LANES), _clamped_index_map(inner, blocks_z, steps)),
    ]
    out_spec = pl.BlockSpec((1, 8, _LANES), lambda p, i: (p, 0, 0))

    nbytes = int(y2.size) * y2.dtype.itemsize + int(z2.size) * z2.dtype.itemsize
    cost = pl.CostEstimate(flops=ny + nz, transcendentals=ny + nz,
                           bytes_accessed=int(nbytes))

    out = pl.pallas_call(
        _make_log_pair_kernel(ny, br_y, mask_y, nz, br_z, mask_z, inner),
        out_shape=jax.ShapeDtypeStruct((nsplit, 8, _LANES), jnp.float32),
        grid_spec=pltpu.PrefetchScalarGridSpec(
            num_scalar_prefetch=0,
            grid=(nsplit, inner),
            in_specs=in_specs,
            out_specs=out_spec,
            scratch_shapes=[pltpu.VMEM((8, _LANES), jnp.float32),
                            pltpu.VMEM((8, _LANES), jnp.float32)]),
        compiler_params=pltpu.CompilerParams(
            dimension_semantics=("parallel", "arbitrary"),
            vmem_limit_bytes=_VMEM_LIMIT_BYTES),
        cost_estimate=cost,
    )(y2, z2)

    return jnp.sum(out[:, 0, 0]), jnp.sum(out[:, 1, 0])


# ----------------------------------------------------------------------------
# Module forward
# ----------------------------------------------------------------------------
def rate_distortion_loss(output, target, num_pixels=None):
    """JAX/Pallas equivalent of RateDistortionLoss.forward.

    output: dict with keys 'likelihoods' -> {'y', 'z'}, 'k', 'x_hat_ntc', 'x_hat'
    target: NCHW array
    """
    N, C, H, W = target.shape
    if num_pixels is None:
        num_pixels = N * H * W

    sum_log_y, sum_log_z = _log_pair_sum(output["likelihoods"]["y"],
                                         output["likelihoods"]["z"])
    sse_ntc, sse = _sse_pair_reduce(target, output["x_hat_ntc"],
                                    output["x_hat"])

    n_elems = float(N * C * H * W)
    out = {}
    out["bpp_y"] = sum_log_y / (-math.log(2.0) * num_pixels)
    out["bpp_z"] = sum_log_z / (-math.log(2.0) * num_pixels)
    out["cbr_y"] = jnp.asarray(output["k"], jnp.float32) / n_elems
    out["mse_loss_ntc"] = sse_ntc / n_elems
    out["mse_loss"] = sse / n_elems
    out["bpp_loss"] = out["bpp_y"] + out["bpp_z"]
    out["cbr"] = out["cbr_y"]
    return out


def _reference(output, target, num_pixels=None):
    """Pure-JAX reference mirroring the PyTorch module exactly."""
    N, C, H, W = target.shape
    if num_pixels is None:
        num_pixels = N * H * W
    out = {}
    out["bpp_y"] = jnp.sum(jnp.log(output["likelihoods"]["y"])) / (-math.log(2.0) * num_pixels)
    out["bpp_z"] = jnp.sum(jnp.log(output["likelihoods"]["z"])) / (-math.log(2.0) * num_pixels)
    out["cbr_y"] = output["k"] / (N * C * H * W)
    out["mse_loss_ntc"] = jnp.mean((output["x_hat_ntc"] - target) ** 2)
    out["mse_loss"] = jnp.mean((output["x_hat"] - target) ** 2)
    out["bpp_loss"] = out["bpp_y"] + out["bpp_z"]
    out["cbr"] = out["cbr_y"]
    return out


if __name__ == "__main__":
    key = jax.random.PRNGKey(0)
    k_t, k_xn, k_xh, k_y, k_z = jax.random.split(key, 5)

    # Small shapes consistent with the forward pass (NCHW images, latent likelihoods).
    N, C, H, W = 2, 4, 16, 16
    target = jax.random.uniform(k_t, (N, C, H, W), jnp.float32)
    x_hat_ntc = target + 0.05 * jax.random.normal(k_xn, (N, C, H, W), jnp.float32)
    x_hat = target + 0.05 * jax.random.normal(k_xh, (N, C, H, W), jnp.float32)

    # Likelihoods must be in (0, 1]; y/z have different (downsampled) shapes.
    lik_y = jax.random.uniform(k_y, (N, 8, 4, 4), jnp.float32, minval=0.05, maxval=1.0)
    lik_z = jax.random.uniform(k_z, (N, 8, 2, 2), jnp.float32, minval=0.05, maxval=1.0)

    output = {
        "likelihoods": {"y": lik_y, "z": lik_z},
        "k": jnp.float32(100.0),
        "x_hat_ntc": x_hat_ntc,
        "x_hat": x_hat,
    }

    got = rate_distortion_loss(output, target)
    ref = _reference(output, target)

    jax.block_until_ready(got)

    for name in ["bpp_y", "bpp_z", "cbr_y", "mse_loss_ntc", "mse_loss",
                 "bpp_loss", "cbr"]:
        g = float(got[name])
        r = float(ref[name])
        if not (abs(g - r) <= 1e-4 * max(1.0, abs(r))):
            raise AssertionError(f"{name}: pallas={g} ref={r}")

    print("KERNEL_OK")
</pallas_src>

<mosaic_0001>
module attributes {stable_mosaic.version = 11 : i64} {
  func.func @kernel(%arg0: i32, %arg1: i32, %arg2: memref<8x128xf32, #tpu.memory_space<vmem>>, %arg3: memref<8x128xf32, #tpu.memory_space<vmem>>, %arg4: memref<1x8x128xf32, #tpu.memory_space<vmem>>, %arg5: memref<8x128xf32, #tpu.memory_space<vmem>>, %arg6: memref<8x128xf32, #tpu.memory_space<vmem>>) attributes {dimension_semantics = [#tpu.dimension_semantics<parallel>, #tpu.dimension_semantics<arbitrary>], iteration_bounds = array<i64: 1, 1>, scalar_prefetch = 0 : i64, scratch_operands = 2 : i64, tpu.core_type = #tpu.core_type<tc>, window_params = [{transform_indices = @transform_0, window_bounds = array<i64: 8, 128>}, {transform_indices = @transform_1, window_bounds = array<i64: 8, 128>}, {transform_indices = @transform_2, window_bounds = array<i64: 1, 8, 128>}]} {
    %c0_i32 = arith.constant 0 : i32
    %0 = arith.cmpi eq, %arg1, %c0_i32 : i32
    %1 = arith.extui %0 : i1 to i32
    %c0_i32_0 = arith.constant 0 : i32
    %2 = arith.cmpi ne, %1, %c0_i32_0 : i32
    scf.if %2 {
      %cst_20 = arith.constant 0.000000e+00 : f32
      %48 = vector.broadcast %cst_20 : f32 to vector<8x128xf32>
      %c0_21 = arith.constant 0 : index
      %c0_22 = arith.constant 0 : index
      %49 = vector.load %arg5[%c0_21, %c0_22] : memref<8x128xf32, #tpu.memory_space<vmem>>, vector<8x128xf32>
      tpu.vector_store %arg5[%c0_21, %c0_22], %48 {strides = array<i32>} : memref<8x128xf32, #tpu.memory_space<vmem>>, vector<8x128xf32>,
      %cst_23 = arith.constant 0.000000e+00 : f32
      %50 = vector.broadcast %cst_23 : f32 to vector<8x128xf32>
      %c0_24 = arith.constant 0 : index
      %c0_25 = arith.constant 0 : index
      %51 = vector.load %arg6[%c0_24, %c0_25] : memref<8x128xf32, #tpu.memory_space<vmem>>, vector<8x128xf32>
      tpu.vector_store %arg6[%c0_24, %c0_25], %50 {strides = array<i32>} : memref<8x128xf32, #tpu.memory_space<vmem>>, vector<8x128xf32>,
    } else {
    }
    %c0 = arith.constant 0 : index
    %c0_1 = arith.constant 0 : index
    %3 = vector.load %arg2[%c0, %c0_1] : memref<8x128xf32, #tpu.memory_space<vmem>>, vector<8x128xf32>
    %c0_2 = arith.constant 0 : index
    %c0_3 = arith.constant 0 : index
    %4 = vector.load %arg3[%c0_2, %c0_3] : memref<8x128xf32, #tpu.memory_space<vmem>>, vector<8x128xf32>
    %c1_i32 = arith.constant 1 : i32
    %5 = arith.muli %arg0, %c1_i32 : i32
    %6 = arith.addi %5, %arg1 : i32
    %c1024_i32 = arith.constant 1024 : i32
    %7 = arith.muli %6, %c1024_i32 : i32
    %8 = tpu.iota {dimensions = array<i32: 0>} : vector<8x128xi32>
    %9 = tpu.iota {dimensions = array<i32: 1>} : vector<8x128xi32>
    %c128_i32 = arith.constant 128 : i32
    %10 = vector.broadcast %c128_i32 : i32 to vector<8x128xi32>
    %11 = arith.muli %8, %10 : vector<8x128xi32>
    %12 = vector.broadcast %7 : i32 to vector<8x128xi32>
    %13 = arith.addi %12, %11 : vector<8x128xi32>
    %14 = arith.addi %13, %9 : vector<8x128xi32>
    %c256_i32 = arith.constant 256 : i32
    %15 = vector.broadcast %c256_i32 : i32 to vector<8x128xi32>
    %16 = arith.cmpi slt, %14, %15 : vector<8x128xi32>
    %cst = arith.constant 1.000000e+00 : f32
    %17 = vector.broadcast %cst : f32 to vector<8x128xf32>
    %18 = arith.select %16, %3, %17 : vector<8x128xi1>, vector<8x128xf32>
    %c1_i32_4 = arith.constant 1 : i32
    %19 = arith.muli %arg0, %c1_i32_4 : i32
    %20 = arith.addi %19, %arg1 : i32
    %c1024_i32_5 = arith.constant 1024 : i32
    %21 = arith.muli %20, %c1024_i32_5 : i32
    %22 = tpu.iota {dimensions = array<i32: 0>} : vector<8x128xi32>
    %23 = tpu.iota {dimensions = array<i32: 1>} : vector<8x128xi32>
    %c128_i32_6 = arith.constant 128 : i32
    %24 = vector.broadcast %c128_i32_6 : i32 to vector<8x128xi32>
    %25 = arith.muli %22, %24 : vector<8x128xi32>
    %26 = vector.broadcast %21 : i32 to vector<8x128xi32>
    %27 = arith.addi %26, %25 : vector<8x128xi32>
    %28 = arith.addi %27, %23 : vector<8x128xi32>
    %c64_i32 = arith.constant 64 : i32
    %29 = vector.broadcast %c64_i32 : i32 to vector<8x128xi32>
    %30 = arith.cmpi slt, %28, %29 : vector<8x128xi32>
    %cst_7 = arith.constant 1.000000e+00 : f32
    %31 = vector.broadcast %cst_7 : f32 to vector<8x128xf32>
    %32 = arith.select %30, %4, %31 : vector<8x128xi1>, vector<8x128xf32>
    %c0_8 = arith.constant 0 : index
    %c0_9 = arith.constant 0 : index
    %33 = vector.load %arg5[%c0_8, %c0_9] : memref<8x128xf32, #tpu.memory_space<vmem>>, vector<8x128xf32>
    %34 = math.log %18 : vector<8x128xf32>
    %35 = vector.shape_cast %34 : vector<8x128xf32> to vector<1x8x128xf32>
    %cst_10 = arith.constant dense<0.000000e+00> : vector<8x128xf32>
    %36 = vector.multi_reduction <add>, %35, %cst_10 [0] : vector<1x8x128xf32> to vector<8x128xf32>
    %37 = arith.addf %33, %36 : vector<8x128xf32>
    %c0_11 = arith.constant 0 : index
    %c0_12 = arith.constant 0 : index
    %38 = vector.load %arg5[%c0_11, %c0_12] : memref<8x128xf32, #tpu.memory_space<vmem>>, vector<8x128xf32>
    tpu.vector_store %arg5[%c0_11, %c0_12], %37 {strides = array<i32>} : memref<8x128xf32, #tpu.memory_space<vmem>>, vector<8x128xf32>,
    %c0_13 = arith.constant 0 : index
    %c0_14 = arith.constant 0 : index
    %39 = vector.load %arg6[%c0_13, %c0_14] : memref<8x128xf32, #tpu.memory_space<vmem>>, vector<8x128xf32>
    %40 = math.log %32 : vector<8x128xf32>
    %41 = vector.shape_cast %40 : vector<8x128xf32> to vector<1x8x128xf32>
    %cst_15 = arith.constant dense<0.000000e+00> : vector<8x128xf32>
    %42 = vector.multi_reduction <add>, %41, %cst_15 [0] : vector<1x8x128xf32> to vector<8x128xf32>
    %43 = arith.addf %39, %42 : vector<8x128xf32>
    %c0_16 = arith.constant 0 : index
    %c0_17 = arith.constant 0 : index
    %44 = vector.load %arg6[%c0_16, %c0_17] : memref<8x128xf32, #tpu.memory_space<vmem>>, vector<8x128xf32>
    tpu.vector_store %arg6[%c0_16, %c0_17], %43 {strides = array<i32>} : memref<8x128xf32, #tpu.memory_space<vmem>>, vector<8x128xf32>,
    %c0_i32_18 = arith.constant 0 : i32
    %45 = arith.cmpi eq, %arg1, %c0_i32_18 : i32
    %46 = arith.extui %45 : i1 to i32
    %c0_i32_19 = arith.constant 0 : i32
    %47 = arith.cmpi ne, %46, %c0_i32_19 : i32
    scf.if %47 {
      %c0_20 = arith.constant 0 : index
      %c0_21 = arith.constant 0 : index
      %48 = vector.load %arg5[%c0_20, %c0_21] : memref<8x128xf32, #tpu.memory_space<vmem>>, vector<8x128xf32>
      %49 = vector.shape_cast %48 : vector<8x128xf32> to vector<1x8x128xf32>
      %cst_22 = arith.constant dense<0.000000e+00> : vector<1xf32>
      %50 = vector.multi_reduction <add>, %49, %cst_22 [1, 2] : vector<1x8x128xf32> to vector<1xf32>
      %51 = vector.shape_cast %50 : vector<1xf32> to vector<1x1x1xf32>
      %52 = vector.extract %51[0, 0, 0] : f32 from vector<1x1x1xf32>
      %c0_23 = arith.constant 0 : index
      %c0_24 = arith.constant 0 : index
      %53 = vector.load %arg6[%c0_23, %c0_24] : memref<8x128xf32, #tpu.memory_space<vmem>>, vector<8x128xf32>
      %54 = vector.shape_cast %53 : vector<8x128xf32> to vector<1x8x128xf32>
      %cst_25 = arith.constant dense<0.000000e+00> : vector<1xf32>
      %55 = vector.multi_reduction <add>, %54, %cst_25 [1, 2] : vector<1x8x128xf32> to vector<1xf32>
      %56 = vector.shape_cast %55 : vector<1xf32> to vector<1x1x1xf32>
      %57 = vector.extract %56[0, 0, 0] : f32 from vector<1x1x1xf32>
      %58 = tpu.iota {dimensions = array<i32: 1>} : vector<1x8x128xi32>
      %c0_i32_26 = arith.constant 0 : i32
      %59 = vector.broadcast %c0_i32_26 : i32 to vector<1x8x128xi32>
      %60 = arith.cmpi eq, %58, %59 : vector<1x8x128xi32>
      %c1_i32_27 = arith.constant 1 : i32
      %61 = vector.broadcast %c1_i32_27 : i32 to vector<1x8x128xi32>
      %62 = arith.cmpi eq, %58, %61 : vector<1x8x128xi32>
      %cst_28 = arith.constant 0.000000e+00 : f32
      %63 = vector.broadcast %57 : f32 to vector<1x8x128xf32>
      %64 = vector.broadcast %cst_28 : f32 to vector<1x8x128xf32>
      %65 = arith.select %62, %63, %64 : vector<1x8x128xi1>, vector<1x8x128xf32>
      %66 = vector.broadcast %52 : f32 to vector<1x8x128xf32>
      %67 = arith.select %60, %66, %65 : vector<1x8x128xi1>, vector<1x8x128xf32>
      %c0_29 = arith.constant 0 : index
      %c0_30 = arith.constant 0 : index
      %c0_31 = arith.constant 0 : index
      %68 = vector.load %arg4[%c0_29, %c0_30, %c0_31] : memref<1x8x128xf32, #tpu.memory_space<vmem>>, vector<1x8x128xf32>
      tpu.vector_store %arg4[%c0_29, %c0_30, %c0_31], %67 {strides = array<i32>} : memref<1x8x128xf32, #tpu.memory_space<vmem>>, vector<1x8x128xf32>,
    } else {
    }
    return
  }
  func.func @transform_0(%arg0: i32, %arg1: i32) -> (i32, i32) {
    %c1_i32 = arith.constant 1 : i32
    %0 = arith.muli %arg0, %c1_i32 : i32
    %1 = arith.addi %0, %arg1 : i32
    %c0_i32 = arith.constant 0 : i32
    %c0_i32_0 = arith.constant 0 : i32
    return %1, %c0_i32 : i32, i32
  }
  func.func @transform_1(%arg0: i32, %arg1: i32) -> (i32, i32) {
    %c1_i32 = arith.constant 1 : i32
    %0 = arith.muli %arg0, %c1_i32 : i32
    %1 = arith.addi %0, %arg1 : i32
    %c0_i32 = arith.constant 0 : i32
    %c0_i32_0 = arith.constant 0 : i32
    return %1, %c0_i32 : i32, i32
  }
  func.func @transform_2(%arg0: i32, %arg1: i32) -> (i32, i32, i32) {
    %c0_i32 = arith.constant 0 : i32
    %c0_i32_0 = arith.constant 0 : i32
    %c0_i32_1 = arith.constant 0 : i32
    return %arg0, %c0_i32, %c0_i32_0 : i32, i32, i32
  }
}

</mosaic_0001>

<bundles_post_ra>
// kernel: tpu_custom_call.1
= control target key start
LH: loop header
LB: loop body
LE: loop exit
PB: predicated region body
PF: predicated region fallthrough
CT: control target
= control target key end

     0   :  { %7 = vsyncpa [#allocation5], 0  ;;  %s246_s0 = inlined_call_operand.hbm [shape: f32[8,128], index: 0, kind: input, shape index: {}]   ;;  %s247_s1 = inlined_call_operand.hbm [shape: f32[8,128], index: 1, kind: input, shape index: {}]   ;;  %s248_s2 = inlined_call_operand.hbm [shape: f32[1,8,128], index: 2, kind: output, shape index: {}]  }
   0x1   :  { %8 = vsyncpa [#allocation8], 0 }
   0x2   :  { %9 = vsyncpa [#allocation6], 0  ;;  %s18_s11 = sshll.u32 %s246_s0, 4  ;;  %s219_s12 = smov [#allocation4]   ;;  %s19_s11 = int_to_ptr.hbm [resolvable:$true] %s18_s11 }
   0x3   :  { %s20_s13 = sshll.u32 %s219_s12, 4  ;;  %s32_s16 = sshll.u32 %s247_s1, 4  ;;  %s21_s13 = int_to_ptr.vmem [resolvable:$true] %s20_s13  ;;  %s33_s16 = int_to_ptr.hbm [resolvable:$true] %s32_s16 }
   0x4   :  { %23 = dma.hbm_to_vmem [thread:$0]  %s19_s11, 128, %s21_s13, [#allocation5]  }
   0x5   :  { %s220_s17 = smov [#allocation7]  }
   0x6   :  { %s34_s18 = sshll.u32 %s220_s17, 4  ;;  %s35_s18 = int_to_ptr.vmem [resolvable:$true] %s34_s18 }
   0x7   :  { %37 = dma.hbm_to_vmem [thread:$0]  %s33_s16, 128, %s35_s18, [#allocation8]  }
   0x8   :  { %213 = dma.done.wait [#allocation5], 128  }
   0x9   :  { %214 = vsyncadd [#allocation5], 4294967168 }
   0xa   :  { %215 = dma.done.wait [#allocation8], 128  }
   0xb   :  { %216 = vsyncadd [#allocation8], 4294967168  ;;  %v58_v0 = vlaneseq  ;;  %v54_v5 = vld [vmem:[#allocation4] sm:$0xff]  ;;  %v55_v6 = vld [vmem:[#allocation7] sm:$0xff]  ;;  %s221_s0 = smov [#allocation9]   ;;  %s119_s22 = sshll.u32 %s248_s2, 4  ;;  %s120_s22 = int_to_ptr.hbm [resolvable:$true] %s119_s22 }
   0xc   :  { %s117_s1 = sshll.u32 %s221_s0, 4  ;;  %s118_s1 = int_to_ptr.vmem [resolvable:$true] %s117_s1 }
   0xd   :  { %v59_v1 = vshrl.u32 %v58_v0, 7  ;;  %v61_v2 = vand.u32 127, %v58_v0 }
   0xf   :  { %v62_v3 = vmul.u32 128, %v59_v1  ;;  %vm106_vm2 = vcmp.eq.s32.totalorder %v59_v1, 1  ;;  %vm105_vm3 = vcmp.eq.s32.totalorder %v59_v1, 0 }
  0x11   :  { %v65_v4 = vadd.s32 %v62_v3, %v61_v2 }
  0x13   :  { %vm66_vm0 = vcmp.lt.s32.totalorder %v65_v4, 256  ;;  %vm68_vm1 = vcmp.lt.s32.totalorder %v65_v4, 64 }
  0x14   :  { %v67_v7 = vsel %vm66_vm0, %v54_v5, 1.0  ;;  %v69_v8 = vsel %vm68_vm1, %v55_v6, 1.0 }
  0x15   :  { %137 = vlog2.f32 %v67_v7 }
  0x16   :  { %139 = vlog2.f32 %v69_v8 }
  0x1b   :  { %v138_v9 = vpop.eup %137 }
  0x1c   :  { %v72_v10 = vmul.f32 0.6931472, %v138_v9  ;;  %v140_v11 = vpop.eup %139 }
  0x1d   :  { %v78_v12 = vmul.f32 0.6931472, %v140_v11 }
  0x1e   :  { %86 = vadd.xlane.f32.xlu0 %v72_v10 }
  0x26   :  { %96 = vadd.xlane.f32.xlu0 %v78_v12 }
  0x91   :  { %v87_v13 = vpop.xlane.xlu0 %86 }
  0x92   :  { %v88_v14 = vrot.slane %v87_v13, 4 }
  0x94   :  { %v89_v15 = vadd.f32 %v88_v14, %v87_v13 }
  0x96   :  { %v90_v16 = vrot.slane %v89_v15, 2 }
  0x98   :  { %v91_v17 = vadd.f32 %v90_v16, %v89_v15 }
  0x99   :  { %v97_v18 = vpop.xlane.xlu0 %96 }
  0x9a   :  { %v98_v19 = vrot.slane %v97_v18, 4  ;;  %v92_v20 = vrot.slane %v91_v17, 1 }
  0x9c   :  { %v99_v21 = vadd.f32 %v98_v19, %v97_v18  ;;  %v93_v22 = vadd.f32 %v92_v20, %v91_v17 }
  0x9e   :  { %v100_v23 = vrot.slane %v99_v21, 2  ;;  %130 = vpush %v93_v22 }
  0xa0   :  { %v101_v24 = vadd.f32 %v100_v23, %v99_v21 }
  0xa2   :  { %v102_v25 = vrot.slane %v101_v24, 1 }
  0xa4   :  { %v103_v26 = vadd.f32 %v102_v25, %v101_v24 }
  0xa6   :  { %132 = vpush %v103_v26 }
  0xcf   :  { %s131_s19 = spop %130 }
  0xd0   :  { %v109_v28 = vstv %s131_s19 }
  0xd7   :  { %s133_s23 = spop %132 }
  0xd8   :  { %v107_v27 = vstv %s133_s23 }
  0xd9   :  { %v108_v29 = vsel %vm106_vm2, %v107_v27, 0.0 }
  0xda   :  { %v110_v30 = vsel %vm105_vm3, %v109_v28, %v108_v29 }
  0xdb   :  { %111 = vst [vmem:[#allocation9] sm:$0xff] %v110_v30 }
  0xdc   :  { %122 = dma.vmem_to_hbm [thread:$0]  %s118_s1, 128, %s120_s22, [#allocation6]  }
  0xdd   :  { %217 = dma.done.wait [#allocation6], 128  }
  0xde   :  { %218 = vsyncadd [#allocation6], 4294967168 }
  0xdf   :  { %127 = vsyncpa [#allocation5], 1 }
  0xe0   :  { %128 = vsyncpa [#allocation8], 1 }
  0xe1   :  { %129 = vsyncpa [#allocation6], 1 }

</bundles_post_ra>
